<compile_context>
chip_gen: v7x
topology: tpu7x:2x2x1
jax: 0.10.0
libtpu: 0.0.40
codegen_flags: <defaults>
</compile_context>

<pallas_src>
import functools

import jax
import jax.numpy as jnp
from jax.experimental import pallas as pl
from jax.experimental.pallas import tpu as pltpu

_LANE = 128                      # lane-dense padded feature width
_VMEM_LIMIT = 48 * 1024 * 1024   # fits v7x (64 MiB phys), raises v5e 16 MiB default


# --------------------------------------------------------------------------
# helpers
# --------------------------------------------------------------------------
def _full_spec(shape):
    nd = len(shape)
    return pl.BlockSpec(shape, lambda i: (0,) * nd)


def _pick_tile(dim, target, align):
    """Largest tile <= target, multiple of `align`, dividing dim (else full dim)."""
    if dim <= target:
        return dim
    t = (target // align) * align
    while t >= align:
        if dim % t == 0:
            return t
        t -= align
    return dim


# --------------------------------------------------------------------------
# Kernel A: one propagation step  out = graph_tile-streamed matmul + epilogue
#   new  = (G @ cur) * scale
#   acc' = acc + new / max(||new||_2, 1e-12)   (row-wise, rsqrt form)
# --------------------------------------------------------------------------
def propagate_step_kernel(g_ref, cur_ref, acc_in_ref,
                          cur_out_ref, acc_out_ref, acc_scratch, *, scale):
    k = pl.program_id(1)

    @pl.when(k == 0)
    def _():
        acc_scratch[...] = jnp.zeros_like(acc_scratch)

    acc_scratch[...] += jnp.dot(g_ref[...], cur_ref[...],
                                preferred_element_type=jnp.float32)

    @pl.when(k == pl.num_programs(1) - 1)
    def _():
        new = acc_scratch[...] * scale
        ss = jnp.sum(new * new, axis=1, keepdims=True)
        inv = jax.lax.rsqrt(jnp.maximum(ss, 1e-24))     # == 1/max(||new||,1e-12)
        acc_out_ref[...] = acc_in_ref[...] + new * inv
        cur_out_ref[...] = new.astype(cur_out_ref.dtype)


def propagate_step(graph_bf16, cur_bf16, acc_f32, scale,
                   tm_target=256, tk_target=512):
    M, K = graph_bf16.shape
    Dp = cur_bf16.shape[1]
    tm = _pick_tile(M, tm_target, 8)
    tk = _pick_tile(K, tk_target, 128)
    grid = (M // tm, K // tk)
    kern = functools.partial(propagate_step_kernel, scale=scale)
    cur_out, acc_out = pl.pallas_call(
        kern,
        out_shape=(jax.ShapeDtypeStruct((M, Dp), jnp.bfloat16),
                   jax.ShapeDtypeStruct((M, Dp), jnp.float32)),
        grid_spec=pltpu.PrefetchScalarGridSpec(
            num_scalar_prefetch=0,
            grid=grid,
            in_specs=[pl.BlockSpec((tm, tk), lambda m, k: (m, k)),
                      pl.BlockSpec((tk, Dp), lambda m, k: (k, 0)),
                      pl.BlockSpec((tm, Dp), lambda m, k: (m, 0))],
            out_specs=(pl.BlockSpec((tm, Dp), lambda m, k: (m, 0)),
                       pl.BlockSpec((tm, Dp), lambda m, k: (m, 0))),
            scratch_shapes=[pltpu.VMEM((tm, Dp), jnp.float32)]),
        compiler_params=pltpu.CompilerParams(
            dimension_semantics=("parallel", "arbitrary"),
            vmem_limit_bytes=_VMEM_LIMIT),
    )(graph_bf16, cur_bf16, acc_f32)
    return cur_out, acc_out


def one_propagate_bipartite(g_hat, a_feat, b_feat, num_layers):
    """LightGCN propagation on the bipartite graph [[0, G],[G^T, 0]] done with
    rectangular matmuls (exploits the zero diagonal blocks)."""
    g_bf = g_hat.astype(jnp.bfloat16)
    gt_bf = g_hat.T.astype(jnp.bfloat16)
    acc_a, acc_b = a_feat, b_feat
    cur_a, cur_b = a_feat.astype(jnp.bfloat16), b_feat.astype(jnp.bfloat16)
    for i in range(num_layers):
        scale = 1.0 / float(i + 2)
        new_a, acc_a = propagate_step(g_bf, cur_b, acc_a, scale)
        new_b, acc_b = propagate_step(gt_bf, cur_a, acc_b, scale)
        cur_a, cur_b = new_a, new_b
    return acc_a, acc_b


# --------------------------------------------------------------------------
# Kernel B1: users_feature = sigmoid(users_prop)   (row-tiled elementwise)
# --------------------------------------------------------------------------
def sigmoid_kernel(x_ref, o_ref):
    o_ref[...] = jax.nn.sigmoid(x_ref[...])


def sigmoid_rows(x, tm_target=512):
    M, Dp = x.shape
    tm = _pick_tile(M, tm_target, 8)
    return pl.pallas_call(
        sigmoid_kernel,
        out_shape=jax.ShapeDtypeStruct((M, Dp), jnp.float32),
        grid=(M // tm,),
        in_specs=[pl.BlockSpec((tm, Dp), lambda m: (m, 0))],
        out_specs=pl.BlockSpec((tm, Dp), lambda m: (m, 0)),
        compiler_params=pltpu.CompilerParams(
            dimension_semantics=("parallel",),
            vmem_limit_bytes=_VMEM_LIMIT),
    )(x)


# --------------------------------------------------------------------------
# Kernel B2: exercise finalize (row-tiled over exercises)
#   ex   = sigmoid(e @ Wa + k @ Wb + b)      (split cat-matmul)
#   know = agg_graph @ knowledge_prop
# --------------------------------------------------------------------------
def exercise_finalize_kernel(e_ref, k_ref, agg_ref, know_ref,
                             wa_ref, wb_ref, b_ref, ex_out, know_out):
    z = (jnp.dot(e_ref[...], wa_ref[...], preferred_element_type=jnp.float32)
         + jnp.dot(k_ref[...], wb_ref[...], preferred_element_type=jnp.float32)
         + b_ref[...])
    ex_out[...] = jax.nn.sigmoid(z)
    know_out[...] = jnp.dot(agg_ref[...], know_ref[...],
                            preferred_element_type=jnp.float32)


def exercise_finalize(e_ex, k_ex, agg, know, wa_p, wb_p, b_p, tm_target=256):
    NE, Dp = e_ex.shape
    NK = know.shape[0]
    tm = _pick_tile(NE, tm_target, 8)
    return pl.pallas_call(
        exercise_finalize_kernel,
        out_shape=(jax.ShapeDtypeStruct((NE, Dp), jnp.float32),
                   jax.ShapeDtypeStruct((NE, Dp), jnp.float32)),
        grid=(NE // tm,),
        in_specs=[pl.BlockSpec((tm, Dp), lambda m: (m, 0)),
                  pl.BlockSpec((tm, Dp), lambda m: (m, 0)),
                  pl.BlockSpec((tm, NK), lambda m: (m, 0)),
                  pl.BlockSpec((NK, Dp), lambda m: (0, 0)),
                  pl.BlockSpec((Dp, Dp), lambda m: (0, 0)),
                  pl.BlockSpec((Dp, Dp), lambda m: (0, 0)),
                  pl.BlockSpec((1, Dp), lambda m: (0, 0))],
        out_specs=(pl.BlockSpec((tm, Dp), lambda m: (m, 0)),
                   pl.BlockSpec((tm, Dp), lambda m: (m, 0))),
        compiler_params=pltpu.CompilerParams(
            dimension_semantics=("parallel",),
            vmem_limit_bytes=_VMEM_LIMIT),
    )(e_ex, k_ex, agg, know, wa_p, wb_p, b_p)


# --------------------------------------------------------------------------
# Kernel C: prediction head + MSE loss (batch is tiny, single block)
# --------------------------------------------------------------------------
def predict_kernel(u_ref, e_ref, k_ref,
                   w1_ref, b1_ref, w2_ref, b2_ref, w3r_ref, b3_ref,
                   labels_ref, loss_ref):
    x = (u_ref[...] - k_ref[...]) * e_ref[...]
    h1 = jax.nn.sigmoid(jnp.dot(x, w1_ref[...],
                                preferred_element_type=jnp.float32) + b1_ref[...])
    h2 = jax.nn.sigmoid(jnp.dot(h1, w2_ref[...],
                                preferred_element_type=jnp.float32) + b2_ref[...])
    # 1-wide output layer as a lane reduction instead of a 1-column matmul
    logit = jnp.sum(h2 * w3r_ref[...], axis=-1, keepdims=True) + b3_ref[...]
    out = jax.nn.sigmoid(logit)
    d2 = (out - labels_ref[...]) ** 2
    loss_ref[...] = jnp.mean(d2, keepdims=True)


def predict_loss(u_emb, e_emb, k_emb, w1_p, b1, w2, b2, w3r, b3, labels_last):
    loss = pl.pallas_call(
        predict_kernel,
        out_shape=jax.ShapeDtypeStruct((1, 1), jnp.float32),
        grid=(1,),
        in_specs=[_full_spec(u_emb.shape), _full_spec(e_emb.shape),
                  _full_spec(k_emb.shape), _full_spec(w1_p.shape),
                  _full_spec(b1.shape), _full_spec(w2.shape),
                  _full_spec(b2.shape), _full_spec(w3r.shape),
                  _full_spec(b3.shape), _full_spec(labels_last.shape)],
        out_specs=_full_spec((1, 1)),
        compiler_params=pltpu.CompilerParams(
            dimension_semantics=("arbitrary",),
            vmem_limit_bytes=_VMEM_LIMIT),
    )(u_emb, e_emb, k_emb, w1_p, b1, w2, b2, w3r, b3, labels_last)
    return loss[0, 0]


# --------------------------------------------------------------------------
# Graph construction glue (dense replacements of the scipy sparse code)
# --------------------------------------------------------------------------
def laplace_norm_rect(g):
    """D_r^-1/2 G D_c^-1/2 — equals the off-diagonal block of the bipartite
    laplace_transform (the diagonal blocks are zero)."""
    dr = 1.0 / (jnp.sqrt(g.sum(axis=1)) + 1e-8)
    dc = 1.0 / (jnp.sqrt(g.sum(axis=0)) + 1e-8)
    return dr[:, None] * g * dc[None, :]


def laplace_transform_dense(g):
    rowsum = g.sum(axis=1)
    colsum = g.sum(axis=0)
    dr = 1.0 / (jnp.sqrt(rowsum) + 1e-8)
    dc = 1.0 / (jnp.sqrt(colsum) + 1e-8)
    return dr[:, None] * g * dc[None, :]


def bipartite(g):
    r, c = g.shape
    top = jnp.concatenate([jnp.zeros((r, r), g.dtype), g], axis=1)
    bot = jnp.concatenate([g.T, jnp.zeros((c, c), g.dtype)], axis=1)
    return jnp.concatenate([top, bot], axis=0)


# --------------------------------------------------------------------------
# Full CD forward (Pallas-backed)
# --------------------------------------------------------------------------
def cd_forward(params, rect_graphs, users, exercises, labels, num_layers):
    g_ue_hat, g_ek_hat, agg_g = rect_graphs
    D = params["users_feature"].shape[1]
    Dp = _LANE

    def pad_feat(x):                       # zero-pad feature dim 32 -> 128
        return jnp.pad(x, ((0, 0), (0, Dp - D)))

    users_p = pad_feat(params["users_feature"])
    ex_p = pad_feat(params["exercises_feature"])
    know_p = pad_feat(params["knowledge_feature"])

    # propagation over the two bipartite graphs (padded cols stay exactly 0)
    users_prop, e_ex_prop = one_propagate_bipartite(g_ue_hat, users_p, ex_p,
                                                    num_layers)
    k_ex_prop, know_prop = one_propagate_bipartite(g_ek_hat, ex_p, know_p,
                                                   num_layers)

    # lane-dense (zero-padded) MLP weights — math identical on the first D cols
    wa_p = jnp.zeros((Dp, Dp), jnp.float32).at[:D, :D].set(params["mlp_wa"])
    wb_p = jnp.zeros((Dp, Dp), jnp.float32).at[:D, :D].set(params["mlp_wb"])
    b_p = jnp.zeros((1, Dp), jnp.float32).at[:, :D].set(params["mlp_b"])

    users_final_p = sigmoid_rows(users_prop)
    ex_final_p, know_final_p = exercise_finalize(
        e_ex_prop, k_ex_prop, agg_g, know_prop, wa_p, wb_p, b_p)

    # gather embeddings (XLA glue); only the last sequence step feeds the head
    u_idx = users[:, -1]
    e_idx = exercises[:, -1]
    u_emb = users_final_p[u_idx]
    e_emb = ex_final_p[e_idx]
    k_emb = know_final_p[e_idx]
    labels_last = labels[:, -1:]

    # zero-padded w1 rows kill the padded lanes of x = (u - k) * e
    L1 = params["w1"].shape[1]
    w1_p = jnp.zeros((Dp, L1), jnp.float32).at[:D, :].set(params["w1"])
    w3r = params["w3"].T                                  # (1, L2)

    loss = predict_loss(u_emb, e_emb, k_emb,
                        w1_p, params["b1"],
                        params["w2"], params["b2"],
                        w3r, params["b3"],
                        labels_last)
    return loss, users_final_p[:, :D]


# --------------------------------------------------------------------------
# Pure-JAX reference (mirrors the PyTorch forward, for verification)
# --------------------------------------------------------------------------
def cd_forward_ref(params, dense_graphs, users, exercises, labels, num_layers):
    ex_level_g, know_level_g, agg_g = dense_graphs
    NU = params["users_feature"].shape[0]
    NE = params["exercises_feature"].shape[0]

    def one_prop_ref(graph, feats):
        acc = feats
        cur = feats
        for i in range(num_layers):
            cur = graph @ cur
            cur = cur / float(i + 2)
            norm = jnp.sqrt(jnp.sum(cur * cur, axis=1, keepdims=True))
            acc = acc + cur / jnp.maximum(norm, 1e-12)
        return acc

    sum_ue = one_prop_ref(ex_level_g, jnp.concatenate(
        [params["users_feature"], params["exercises_feature"]], 0))
    users_prop, e_ex_prop = sum_ue[:NU], sum_ue[NU:]
    sum_ek = one_prop_ref(know_level_g, jnp.concatenate(
        [params["exercises_feature"], params["knowledge_feature"]], 0))
    k_ex_prop, know_prop = sum_ek[:NE], sum_ek[NE:]

    users_final = jax.nn.sigmoid(users_prop)
    mlp_w = jnp.concatenate([params["mlp_wa"], params["mlp_wb"]], axis=0)
    ex_final = jax.nn.sigmoid(
        jnp.concatenate([e_ex_prop, k_ex_prop], 1) @ mlp_w + params["mlp_b"])
    know_final = agg_g @ know_prop

    u_emb = users_final[users[:, -1]]
    e_emb = ex_final[exercises[:, -1]]
    k_emb = know_final[exercises[:, -1]]
    x = (u_emb - k_emb) * e_emb
    h1 = jax.nn.sigmoid(x @ params["w1"] + params["b1"])
    h2 = jax.nn.sigmoid(h1 @ params["w2"] + params["b2"])
    out = jax.nn.sigmoid(h2 @ params["w3"] + params["b3"])
    loss = jnp.mean((out[:, -1] - labels[:, -1]) ** 2)
    return loss, users_final


# --------------------------------------------------------------------------
# Main
# --------------------------------------------------------------------------
if __name__ == "__main__":
    # conf: embedding_size = batch_size_train = 32 (prednet_full1 requires it)
    D = 32            # embedding_size == batch_size_train
    NU = 32           # num_users + 1
    NE = 32           # num_exercises + 1
    NK = 32           # num_knowledge + 1
    L1, L2 = 512, 256  # prednet_len1, prednet_len2
    NUM_LAYERS = 2
    B, S = 8, 8       # batch, sequence length

    key = jax.random.PRNGKey(0)
    ks = jax.random.split(key, 16)

    def xavier(k, shape):
        fan_in, fan_out = shape[0], shape[1]
        std = (2.0 / (fan_in + fan_out)) ** 0.5
        return std * jax.random.normal(k, shape, dtype=jnp.float32)

    params = {
        "users_feature":     xavier(ks[0], (NU, D)),
        "exercises_feature": xavier(ks[1], (NE, D)),
        "knowledge_feature": xavier(ks[2], (NK, D)),
        # nn.Linear(2D, D) stored as two (D, D) halves (row-major in->out)
        "mlp_wa": xavier(ks[3], (D, D)),
        "mlp_wb": xavier(ks[4], (D, D)),
        "mlp_b":  0.01 * jax.random.normal(ks[5], (1, D), dtype=jnp.float32),
        # prednet linears stored as (in, out)
        "w1": xavier(ks[6], (D, L1)),
        "b1": 0.01 * jax.random.normal(ks[7], (1, L1), dtype=jnp.float32),
        "w2": xavier(ks[8], (L1, L2)),
        "b2": 0.01 * jax.random.normal(ks[9], (1, L2), dtype=jnp.float32),
        "w3": xavier(ks[10], (L2, 1)),
        "b3": 0.01 * jax.random.normal(ks[11], (1, 1), dtype=jnp.float32),
    }

    # raw bipartite interaction graphs (dense stand-ins for scipy sparse ones)
    ue_graph = jax.random.bernoulli(ks[12], 0.3, (NU, NE)).astype(jnp.float32)
    ek_graph = jax.random.bernoulli(ks[13], 0.3, (NE, NK)).astype(jnp.float32)

    # Pallas path: rectangular normalized graphs (off-diagonal bipartite block)
    g_ue_hat = laplace_norm_rect(ue_graph)
    g_ek_hat = laplace_norm_rect(ek_graph)
    agg_graph = ek_graph / (ek_graph.sum(axis=1, keepdims=True) + 1e-8)
    rect_graphs = (g_ue_hat, g_ek_hat, agg_graph)

    # reference path: full dense bipartite Laplacians (exactly the PyTorch math)
    dense_graphs = (laplace_transform_dense(bipartite(ue_graph)),
                    laplace_transform_dense(bipartite(ek_graph)),
                    agg_graph)

    users = jax.random.randint(ks[14], (B, S), 0, NU)
    exercises = jax.random.randint(ks[15], (B, S), 0, NE)
    labels = jax.random.uniform(jax.random.PRNGKey(42), (B, S),
                                dtype=jnp.float32)

    loss, users_feature = cd_forward(params, rect_graphs, users, exercises,
                                     labels, NUM_LAYERS)
    jax.block_until_ready((loss, users_feature))

    # verify against the pure-JAX fp32 reference (bf16 graph stream -> ~1e-3)
    loss_ref, users_ref = cd_forward_ref(params, dense_graphs, users,
                                         exercises, labels, NUM_LAYERS)
    assert jnp.allclose(loss, loss_ref, atol=1e-2, rtol=1e-2), (loss, loss_ref)
    assert jnp.allclose(users_feature, users_ref, atol=1e-2, rtol=1e-2)

    print("KERNEL_OK")
</pallas_src>

<mosaic_0001>
module attributes {stable_mosaic.version = 11 : i64} {
  func.func @propagate_step_kernel(%arg0: i32, %arg1: i32, %arg2: memref<32x32xbf16, #tpu.memory_space<vmem>>, %arg3: memref<32x128xbf16, #tpu.memory_space<vmem>>, %arg4: memref<32x128xf32, #tpu.memory_space<vmem>>, %arg5: memref<32x128xbf16, #tpu.memory_space<vmem>>, %arg6: memref<32x128xf32, #tpu.memory_space<vmem>>, %arg7: memref<32x128xf32, #tpu.memory_space<vmem>>) attributes {dimension_semantics = [#tpu.dimension_semantics<parallel>, #tpu.dimension_semantics<arbitrary>], iteration_bounds = array<i64: 1, 1>, scalar_prefetch = 0 : i64, scratch_operands = 1 : i64, tpu.core_type = #tpu.core_type<tc>, window_params = [{transform_indices = @transform_0, window_bounds = array<i64: 32, 32>}, {transform_indices = @transform_1, window_bounds = array<i64: 32, 128>}, {transform_indices = @transform_2, window_bounds = array<i64: 32, 128>}, {transform_indices = @transform_3, window_bounds = array<i64: 32, 128>}, {transform_indices = @transform_4, window_bounds = array<i64: 32, 128>}]} {
    %c0_i32 = arith.constant 0 : i32
    %0 = arith.cmpi eq, %arg1, %c0_i32 : i32
    %1 = arith.extui %0 : i1 to i32
    %c0_i32_0 = arith.constant 0 : i32
    %2 = arith.cmpi ne, %1, %c0_i32_0 : i32
    scf.if %2 {
      %cst_10 = arith.constant 0.000000e+00 : f32
      %12 = vector.broadcast %cst_10 : f32 to vector<32x128xf32>
      %c0_11 = arith.constant 0 : index
      %c0_12 = arith.constant 0 : index
      %13 = vector.load %arg7[%c0_11, %c0_12] : memref<32x128xf32, #tpu.memory_space<vmem>>, vector<32x128xf32>
      tpu.vector_store %arg7[%c0_11, %c0_12], %12 {strides = array<i32>} : memref<32x128xf32, #tpu.memory_space<vmem>>, vector<32x128xf32>,
    } else {
    }
    %c0 = arith.constant 0 : index
    %c0_1 = arith.constant 0 : index
    %3 = vector.load %arg7[%c0, %c0_1] : memref<32x128xf32, #tpu.memory_space<vmem>>, vector<32x128xf32>
    %c0_2 = arith.constant 0 : index
    %c0_3 = arith.constant 0 : index
    %4 = vector.load %arg2[%c0_2, %c0_3] : memref<32x32xbf16, #tpu.memory_space<vmem>>, vector<32x32xbf16>
    %c0_4 = arith.constant 0 : index
    %c0_5 = arith.constant 0 : index
    %5 = vector.load %arg3[%c0_4, %c0_5] : memref<32x128xbf16, #tpu.memory_space<vmem>>, vector<32x128xbf16>
    %cst = arith.constant dense<0.000000e+00> : vector<32x128xf32>
    %6 = tpu.matmul %4, %5, %cst {dimension_numbers = #tpu.dot_dimension_numbers<[1], [0], [0], [1], [0, 0, 1, 1], [], []>} : vector<32x32xbf16>, vector<32x128xbf16>, vector<32x128xf32> -> vector<32x128xf32>
    %7 = arith.addf %3, %6 : vector<32x128xf32>
    %c0_6 = arith.constant 0 : index
    %c0_7 = arith.constant 0 : index
    %8 = vector.load %arg7[%c0_6, %c0_7] : memref<32x128xf32, #tpu.memory_space<vmem>>, vector<32x128xf32>
    tpu.vector_store %arg7[%c0_6, %c0_7], %7 {strides = array<i32>} : memref<32x128xf32, #tpu.memory_space<vmem>>, vector<32x128xf32>,
    %c0_i32_8 = arith.constant 0 : i32
    %9 = arith.cmpi eq, %arg1, %c0_i32_8 : i32
    %10 = arith.extui %9 : i1 to i32
    %c0_i32_9 = arith.constant 0 : i32
    %11 = arith.cmpi ne, %10, %c0_i32_9 : i32
    scf.if %11 {
      %c0_10 = arith.constant 0 : index
      %c0_11 = arith.constant 0 : index
      %12 = vector.load %arg7[%c0_10, %c0_11] : memref<32x128xf32, #tpu.memory_space<vmem>>, vector<32x128xf32>
      %cst_12 = arith.constant 5.000000e-01 : f32
      %13 = vector.broadcast %cst_12 : f32 to vector<32x128xf32>
      %14 = arith.mulf %12, %13 : vector<32x128xf32>
      %15 = arith.mulf %14, %14 : vector<32x128xf32>
      %cst_13 = arith.constant dense<0.000000e+00> : vector<32xf32>
      %16 = vector.multi_reduction <add>, %15, %cst_13 [1] : vector<32x128xf32> to vector<32xf32>
      %17 = vector.shape_cast %16 : vector<32xf32> to vector<32x1xf32>
      %cst_14 = arith.constant 1.000000e-24 : f32
      %18 = vector.broadcast %cst_14 : f32 to vector<32x1xf32>
      %19 = arith.maximumf %17, %18 : vector<32x1xf32>
      %20 = math.rsqrt %19 : vector<32x1xf32>
      %c0_15 = arith.constant 0 : index
      %c0_16 = arith.constant 0 : index
      %21 = vector.load %arg4[%c0_15, %c0_16] : memref<32x128xf32, #tpu.memory_space<vmem>>, vector<32x128xf32>
      %22 = vector.broadcast %20 : vector<32x1xf32> to vector<32x128xf32>
      %23 = arith.mulf %14, %22 : vector<32x128xf32>
      %24 = arith.addf %21, %23 : vector<32x128xf32>
      %c0_17 = arith.constant 0 : index
      %c0_18 = arith.constant 0 : index
      %25 = vector.load %arg6[%c0_17, %c0_18] : memref<32x128xf32, #tpu.memory_space<vmem>>, vector<32x128xf32>
      tpu.vector_store %arg6[%c0_17, %c0_18], %24 {strides = array<i32>} : memref<32x128xf32, #tpu.memory_space<vmem>>, vector<32x128xf32>,
      %26 = arith.truncf %14 : vector<32x128xf32> to vector<32x128xbf16>
      %c0_19 = arith.constant 0 : index
      %c0_20 = arith.constant 0 : index
      %27 = vector.load %arg5[%c0_19, %c0_20] : memref<32x128xbf16, #tpu.memory_space<vmem>>, vector<32x128xbf16>
      tpu.vector_store %arg5[%c0_19, %c0_20], %26 {strides = array<i32>} : memref<32x128xbf16, #tpu.memory_space<vmem>>, vector<32x128xbf16>,
    } else {
    }
    return
  }
  func.func @transform_0(%arg0: i32, %arg1: i32) -> (i32, i32) {
    %c0_i32 = arith.constant 0 : i32
    return %arg0, %arg1 : i32, i32
  }
  func.func @transform_1(%arg0: i32, %arg1: i32) -> (i32, i32) {
    %c0_i32 = arith.constant 0 : i32
    %c0_i32_0 = arith.constant 0 : i32
    return %arg1, %c0_i32 : i32, i32
  }
  func.func @transform_2(%arg0: i32, %arg1: i32) -> (i32, i32) {
    %c0_i32 = arith.constant 0 : i32
    %c0_i32_0 = arith.constant 0 : i32
    return %arg0, %c0_i32 : i32, i32
  }
  func.func @transform_3(%arg0: i32, %arg1: i32) -> (i32, i32) {
    %c0_i32 = arith.constant 0 : i32
    %c0_i32_0 = arith.constant 0 : i32
    return %arg0, %c0_i32 : i32, i32
  }
  func.func @transform_4(%arg0: i32, %arg1: i32) -> (i32, i32) {
    %c0_i32 = arith.constant 0 : i32
    %c0_i32_0 = arith.constant 0 : i32
    return %arg0, %c0_i32 : i32, i32
  }
}

</mosaic_0001>

<bundles_post_ra>
// kernel: tpu_custom_call.1
= control target key start
LH: loop header
LB: loop body
LE: loop exit
PB: predicated region body
PF: predicated region fallthrough
CT: control target
= control target key end

     0   :  { %10 = vsyncpa [#allocation4], 0  ;;  %s559_s0 = inlined_call_operand.hbm [shape: bf16[32,32], index: 0, kind: input, shape index: {}]   ;;  %s560_s1 = inlined_call_operand.hbm [shape: bf16[32,128], index: 1, kind: input, shape index: {}]   ;;  %s561_s2 = inlined_call_operand.hbm [shape: f32[32,128], index: 2, kind: input, shape index: {}]   ;;  %s562_s3 = inlined_call_operand.hbm [shape: bf16[32,128], index: 3, kind: output, shape index: {0}]   ;;  %s563_s4 = inlined_call_operand.hbm [shape: f32[32,128], index: 4, kind: output, shape index: {1}]  }
   0x1   :  { %11 = vsyncpa [#allocation7], 0 }
   0x2   :  { %12 = vsyncpa [#allocation5], 0 }
   0x3   :  { %13 = vsyncpa [#allocation11], 0  ;;  %s443_s15 = smov [#allocation6]   ;;  %s444_s17 = smov [#allocation3]  }
   0x4   :  { %s31_s16 = sshll.u32 %s443_s15, 4  ;;  %s19_s18 = sshll.u32 %s444_s17, 4  ;;  %s32_s16 = int_to_ptr.vmem [resolvable:$true] %s31_s16  ;;  %s477_s18 = int_to_ptr.vmem [resolvable:$true] %s19_s18 }
   0x5   :  { %s325_s21 = scalar_lea.hbm %s560_s1, 256 }
   0x6   :  { %p326_p0 = scmp.ne.s32.totalorder %s560_s1, %s325_s21  ;;  %p329_p1 = scmp.lt.u32.totalorder %s325_s21, %s560_s1 }
   0x8   :  { %p331_p2 = pnand %p329_p1, %p326_p0 }
   0xa   :  { %334 = shalt.err (!%p331_p2)
}
   0xb   :  { %s335_s26 = scalar_lea.vmem %s32_s16, 256  ;;  %p340_p4 = scmp.lt.s32.totalorder %s32_s16, %s32_s16 }
   0xc   :  { %p336_p3 = scmp.ne.s32.totalorder %s32_s16, %s335_s26  ;;  %p341_p5 = scmp.lt.s32.totalorder %s335_s26, %s335_s26 }
   0xe   :  { %p342_p6 = por %p341_p5, %p340_p4 }
  0x10   :  { %p343_p7 = pnand %p342_p6, %p336_p3 }
  0x12   :  { %346 = shalt.err (!%p343_p7)
}
  0x13   :  { %s445_s27 = smov 64   ;;  %s446_s28 = smov 4  }
  0x14   :  { %37 = dma.hbm_to_vmem [thread:$0]  %s560_s1, 256, %s32_s16, [#allocation7], %s445_s27, %s445_s27, %s446_s28  }
  0x15   :  { %s347_s7 = scalar_lea.hbm %s559_s0, 256 }
  0x16   :  { %p348_p8 = scmp.ne.s32.totalorder %s559_s0, %s347_s7  ;;  %p351_p9 = scmp.lt.u32.totalorder %s347_s7, %s559_s0 }
  0x18   :  { %p353_p10 = pnand %p351_p9, %p348_p8 }
  0x1a   :  { %356 = shalt.err (!%p353_p10)
}
  0x1b   :  { %s357_s12 = scalar_lea.vmem %s477_s18, 256  ;;  %p362_p12 = scmp.lt.s32.totalorder %s477_s18, %s477_s18 }
  0x1c   :  { %p358_p11 = scmp.ne.s32.totalorder %s477_s18, %s357_s12  ;;  %p363_p13 = scmp.lt.s32.totalorder %s357_s12, %s357_s12 }
  0x1e   :  { %p364_p0 = por %p363_p13, %p362_p12 }
  0x20   :  { %p365_p1 = pnand %p364_p0, %p358_p11 }
  0x22   :  { %368 = shalt.err (!%p365_p1)
}
  0x23   :  { %25 = dma.hbm_to_vmem [thread:$0]  %s559_s0, 256, %s477_s18, [#allocation4], %s445_s27, %s445_s27, %s446_s28  }
  0x24   :  { %s447_s14 = smov [#allocation8]   ;;  %s369_s19 = scalar_lea.hbm %s561_s2, 512 }
  0x25   :  { %s43_s15 = sshll.u32 %s447_s14, 4  ;;  %p370_p2 = scmp.ne.s32.totalorder %s561_s2, %s369_s19  ;;  %s44_s15 = int_to_ptr.vmem [resolvable:$true] %s43_s15 }
  0x26   :  { %p373_p3 = scmp.lt.u32.totalorder %s369_s19, %s561_s2 }
  0x28   :  { %p375_p4 = pnand %p373_p3, %p370_p2 }
  0x2a   :  { %378 = shalt.err (!%p375_p4)
}
  0x2b   :  { %s379_s24 = scalar_lea.vmem %s44_s15, 512  ;;  %p384_p6 = scmp.lt.s32.totalorder %s44_s15, %s44_s15 }
  0x2c   :  { %p380_p5 = scmp.ne.s32.totalorder %s44_s15, %s379_s24  ;;  %p385_p7 = scmp.lt.s32.totalorder %s379_s24, %s379_s24 }
  0x2e   :  { %p386_p8 = por %p385_p7, %p384_p6 }
  0x30   :  { %p387_p9 = pnand %p386_p8, %p380_p5 }
  0x32   :  { %390 = shalt.err (!%p387_p9)
}
  0x33   :  { %s448_s0 = smov 128   ;;  %s449_s18 = smov 8  }
  0x34   :  { %49 = dma.hbm_to_vmem [thread:$0]  %s561_s2, 512, %s44_s15, [#allocation7], %s448_s0, %s448_s0, %s449_s18  }
  0x35   :  { %435 = dma.done.wait [#allocation4], 256  }
  0x36   :  { %436 = vsyncadd [#allocation4], 4294967040 }
  0x37   :  { %437 = dma.done.wait [#allocation7], 768  }
  0x38   :  { %438 = vsyncadd [#allocation7], 4294966528  ;;  %v313_v0 = vld [vmem:[#allocation6] sm:$0xff]   ;;  %v314_v1 = vld [vmem:[#allocation6 + $0x8] sm:$0xff]   ;;  %vm102_vm0 = vcmask 261120   ;;  %s450_s2 = smov [#allocation9]  }
  0x39   :  { %296 = vmatprep.subr.bf16.mxu0 %v313_v0  ;;  %v315_v2 = vld [vmem:[#allocation3] sm:$0xff]   ;;  %v316_v3 = vld [vmem:[#allocation3 + $0x8] sm:$0xff]   ;;  %s238_s29 = sshll.u32 %s450_s2, 4  ;;  %s239_s29 = int_to_ptr.vmem [resolvable:$true] %s238_s29 }
  0x3a   :  { %297 = vmatpush3.bf16.msra.mxu0 %v313_v0  ;;  %300 = vmatprep.mubr.msk.bf16.mxu0 %vm102_vm0, %v315_v2  ;;  %s391_s30 = scalar_lea.vmem %s239_s29, 256  ;;  %p396_p11 = scmp.lt.s32.totalorder %s239_s29, %s239_s29 }
  0x3b   :  { %298 = vmatprep.subr.bf16.mxu0 %v314_v1  ;;  %p392_p10 = scmp.ne.s32.totalorder %s239_s29, %s391_s30  ;;  %p397_p12 = scmp.lt.s32.totalorder %s391_s30, %s391_s30 }
  0x3d   :  { %p398_p13 = por %p397_p12, %p396_p11 }
  0x3e   :  { %299 = vmatpush3.bf16.msra.mxu0 %v314_v1 }
  0x3f   :  { %p399_p0 = pnand %p398_p13, %p392_p10 }
  0x41   :  { %301 = vmatmul.mubr.msk.bf16.vlgmr.msra.gmra.mrb[0].mxu0 %vm102_vm0, %v316_v3 }
 0x114   :  { %v302_v4 = vpop.f32.mrb[0].mxu0 }
 0x115   :  { %v175_v5 = vmul.f32 0.5, %v302_v4  ;;  %v143_v6 = vpop.f32.mrb[1].mxu0 }
 0x116   :  { %v173_v7 = vmul.f32 0.5, %v143_v6  ;;  %v303_v8 = vpop.f32.mrb[2].mxu0 }
 0x117   :  { %v176_v9 = vmul.f32 0.5, %v303_v8  ;;  %v146_v10 = vpop.f32.mrb[3].mxu0  ;;  %v179_v11 = vmul.f32 %v175_v5, %v175_v5 }
 0x118   :  { %v174_v12 = vmul.f32 0.5, %v146_v10  ;;  %v177_v13 = vmul.f32 %v173_v7, %v173_v7 }
 0x119   :  { %v289_v14 = vpack.c.bf16 %v176_v9, %v175_v5  ;;  %185 = vadd.xlane.f32.xlu1 %v179_v11  ;;  %v180_v16 = vmul.f32 %v176_v9, %v176_v9 }
 0x11a   :  { %v284_v15 = vpack.c.bf16 %v174_v12, %v173_v7  ;;  %181 = vadd.xlane.f32.xlu0 %v177_v13  ;;  %v178_v17 = vmul.f32 %v174_v12, %v174_v12 }
 0x11b   :  { %291 = vst [vmem:[#allocation9 + $0x8] sm:$0xff] %v289_v14  }
 0x11c   :  { %285 = vst [vmem:[#allocation9] sm:$0xff] %v284_v15  }
 0x11d   :  { %187 = vadd.xlane.f32.xlu1 %v180_v16 }
 0x11e   :  { %183 = vadd.xlane.f32.xlu0 %v178_v17 }
 0x11f   :  { %402 = shalt.err (!%p399_p0)
}
 0x120   :  { %s403_s7 = scalar_lea.hbm %s562_s3, 256 }
 0x121   :  { %p404_p1 = scmp.ne.s32.totalorder %s562_s3, %s403_s7  ;;  %p407_p2 = scmp.lt.u32.totalorder %s403_s7, %s562_s3 }
 0x123   :  { %p409_p3 = pnand %p407_p2, %p404_p1 }
 0x125   :  { %412 = shalt.err (!%p409_p3)
}
 0x126   :  { %244 = dma.vmem_to_hbm [thread:$0]  %s239_s29, 256, %s562_s3, [#allocation5], %s445_s27, %s445_s27, %s446_s28   ;;  %v199_v27 = vld [vmem:[#allocation8 + $0x10] sm:$0xff]  ;;  %v197_v30 = vld [vmem:[#allocation8] sm:$0xff]  ;;  %v200_v34 = vld [vmem:[#allocation8 + $0x18] sm:$0xff] }
 0x127   :  { %v198_v38 = vld [vmem:[#allocation8 + $0x8] sm:$0xff]  ;;  %s451_s3 = smov [#allocation10]  }
 0x128   :  { %s250_s27 = sshll.u32 %s451_s3, 4  ;;  %s251_s27 = int_to_ptr.vmem [resolvable:$true] %s250_s27 }
 0x129   :  { %s413_s28 = scalar_lea.vmem %s251_s27, 512  ;;  %p418_p5 = scmp.lt.s32.totalorder %s251_s27, %s251_s27 }
 0x12a   :  { %p414_p4 = scmp.ne.s32.totalorder %s251_s27, %s413_s28  ;;  %p419_p6 = scmp.lt.s32.totalorder %s413_s28, %s413_s28 }
 0x12c   :  { %p420_p7 = por %p419_p6, %p418_p5 }
 0x12e   :  { %p421_p8 = pnand %p420_p7, %p414_p4 }
 0x1a6   :  { %v186_v18 = vpop.xlane.xlu1 %185 }
 0x1a7   :  { %v191_v19 = vmax.f32 %v186_v18, 1e-24  ;;  %v182_v20 = vpop.xlane.xlu0 %181 }
 0x1a8   :  { %v189_v21 = vmax.f32 %v182_v20, 1e-24 }
 0x1a9   :  { %317 = vrsqrt.f32 %v191_v19 }
 0x1aa   :  { %319 = vrsqrt.f32 %v189_v21  ;;  %v188_v22 = vpop.xlane.xlu1 %187 }
 0x1ab   :  { %v192_v23 = vmax.f32 %v188_v22, 1e-24  ;;  %v184_v24 = vpop.xlane.xlu0 %183 }
 0x1ac   :  { %v190_v25 = vmax.f32 %v184_v24, 1e-24 }
 0x1ad   :  { %321 = vrsqrt.f32 %v192_v23 }
 0x1ae   :  { %323 = vrsqrt.f32 %v190_v25 }
 0x1b3   :  { %v318_v26 = vpop.eup %317 }
 0x1b4   :  { %v320_v28 = vpop.eup %319  ;;  %v203_v29 = vmul.f32 %v318_v26, %v175_v5 }
 0x1b5   :  { %v201_v31 = vmul.f32 %v320_v28, %v173_v7 }
 0x1b6   :  { %v207_v32 = vadd.f32 %v203_v29, %v199_v27 }
 0x1b7   :  { %v322_v33 = vpop.eup %321  ;;  %v205_v35 = vadd.f32 %v201_v31, %v197_v30 }
 0x1b8   :  { %v324_v36 = vpop.eup %323  ;;  %v204_v37 = vmul.f32 %v322_v33, %v176_v9  ;;  %211 = vst [vmem:[#allocation10 + $0x10] sm:$0xff] %v207_v32 }
 0x1b9   :  { %v202_v39 = vmul.f32 %v324_v36, %v174_v12  ;;  %209 = vst [vmem:[#allocation10] sm:$0xff] %v205_v35 }
 0x1ba   :  { %v208_v40 = vadd.f32 %v204_v37, %v200_v34 }
 0x1bb   :  { %v206_v41 = vadd.f32 %v202_v39, %v198_v38 }
 0x1bc   :  { %212 = vst [vmem:[#allocation10 + $0x18] sm:$0xff] %v208_v40 }
 0x1bd   :  { %210 = vst [vmem:[#allocation10 + $0x8] sm:$0xff] %v206_v41 }
 0x1be   :  { %424 = shalt.err (!%p421_p8)
}
 0x1bf   :  { %s425_s15 = scalar_lea.hbm %s563_s4, 512 }
 0x1c0   :  { %p426_p9 = scmp.ne.s32.totalorder %s563_s4, %s425_s15  ;;  %p429_p10 = scmp.lt.u32.totalorder %s425_s15, %s563_s4 }
 0x1c2   :  { %p431_p11 = pnand %p429_p10, %p426_p9 }
 0x1c4   :  { %434 = shalt.err (!%p431_p11)
}
 0x1c5   :  { %256 = dma.vmem_to_hbm [thread:$0]  %s251_s27, 512, %s563_s4, [#allocation11], %s448_s0, %s448_s0, %s449_s18  }
 0x1c6   :  { %439 = dma.done.wait [#allocation5], 256  }
 0x1c7   :  { %440 = vsyncadd [#allocation5], 4294967040 }
 0x1c8   :  { %441 = dma.done.wait [#allocation11], 512  }
 0x1c9   :  { %442 = vsyncadd [#allocation11], 4294966784 }
 0x1ca   :  { %263 = vsyncpa [#allocation4], 1 }
 0x1cb   :  { %264 = vsyncpa [#allocation7], 1 }
 0x1cc   :  { %265 = vsyncpa [#allocation5], 1 }
 0x1cd   :  { %266 = vsyncpa [#allocation11], 1 }

</bundles_post_ra>
